<compile_context>
chip_gen: v7x
topology: tpu7x:2x2x1
jax: 0.10.0
libtpu: 0.0.40
codegen_flags: <defaults>
</compile_context>

<pallas_src>
import numpy as np

import jax
import jax.numpy as jnp
from jax.experimental import pallas as pl
from jax.experimental.pallas import tpu as pltpu


def _round_up(a: int, b: int) -> int:
    return ((a + b - 1) // b) * b


def graphconv_segment_sum_kernel(dst_ref, gath_ref, xroot_ref, o_ref):
    """One (tm, F_pad) output tile; consumes one edge block per grid step.

    dst_ref:   (1, 1, 1, te) int32  destination node id of each edge (-1 = padding)
    gath_ref:  (1, 1, te, F_pad)    x[src] rows for the same edges
    xroot_ref: (tm, F_pad)          x rows of this tile (root term, W_root = I)
    o_ref:     (tm, F_pad)          output tile, resident across the edge axis
    """
    tm = o_ref.shape[0]
    te = dst_ref.shape[-1]

    @pl.when(pl.program_id(1) == 0)
    def _init():
        o_ref[...] = xroot_ref[...]          # W_root = I, b = 0  -> root term

    # one_hot[r, e] = 1 iff edge e targets global row (tile_start + r).
    rows = jax.lax.broadcasted_iota(jnp.int32, (tm, te), 0) + pl.program_id(0) * tm
    one = jnp.asarray(1, dtype=gath_ref.dtype)
    zero = jnp.asarray(0, dtype=gath_ref.dtype)
    one_hot = jnp.where(dst_ref[0, 0] == rows, one, zero)     # (tm, te)

    # Scatter-add of this edge block via a small MXU matmul (W_rel = I).
    o_ref[...] += jnp.dot(one_hot, gath_ref[0, 0],
                          preferred_element_type=jnp.float32).astype(o_ref.dtype)


def embedding_forward(x, edge_index, *, tm=32):
    """Forward pass of Embedding(type='GraphConv') with its frozen parameters.

    x:          [N, F] float node features.
    edge_index: [2, E] int, row 0 = src, row 1 = dst (messages flow src -> dst).
    returns     [N, F], out[i] = x[i] + sum over incoming edges of x[src].
    """
    N, F = x.shape
    dtype = x.dtype

    # ---------- host-side CSR-style preprocessing (concrete edge data) ----------
    src = np.asarray(edge_index[0]).astype(np.int64)
    dst = np.asarray(edge_index[1]).astype(np.int64)
    E = int(src.shape[0])

    N_pad = _round_up(max(N, tm), tm)
    F_pad = _round_up(F, 128)
    num_tiles = N_pad // tm

    order = np.argsort(dst, kind="stable")        # group edges by destination tile
    src_s, dst_s = src[order], dst[order]
    tile_id = dst_s // tm
    counts = np.bincount(tile_id, minlength=num_tiles)[:num_tiles]
    starts = np.concatenate([[0], np.cumsum(counts)[:-1]])
    max_cnt = int(counts.max())

    te = 128 if max_cnt <= 512 else 512           # bigger edge blocks amortize grid overhead
    eb = max(_round_up(max_cnt, te), te)          # padded edge count per destination tile
    num_eblocks = eb // te

    dst_pad = np.full((num_tiles, eb), -1, dtype=np.int32)   # -1 never matches a row id
    src_pad = np.zeros((num_tiles, eb), dtype=np.int32)      # dummy src 0, masked by one-hot
    if E > 0:
        pos = np.arange(E) - starts[tile_id]                 # position of edge within its tile
        dst_pad[tile_id, pos] = dst_s
        src_pad[tile_id, pos] = src_s

    # ---------- device-side: pad, single gather, block-sparse segment sum ----------
    x_pad = jnp.pad(x, ((0, N_pad - N), (0, F_pad - F)))
    gathered = jnp.take(x_pad, jnp.asarray(src_pad.reshape(-1)), axis=0)
    gathered = gathered.reshape(num_tiles, num_eblocks, te, F_pad)
    dst_dev = jnp.asarray(dst_pad.reshape(num_tiles, num_eblocks, 1, te))

    itemsize = jnp.dtype(dtype).itemsize
    cost = pl.CostEstimate(
        flops=2 * num_tiles * eb * tm * F_pad,
        transcendentals=0,
        bytes_accessed=(num_tiles * eb * F_pad + 2 * N_pad * F_pad) * itemsize
        + num_tiles * eb * 4,
    )

    out_pad = pl.pallas_call(
        graphconv_segment_sum_kernel,
        out_shape=jax.ShapeDtypeStruct((N_pad, F_pad), dtype),
        grid_spec=pltpu.PrefetchScalarGridSpec(
            num_scalar_prefetch=0,
            grid=(num_tiles, num_eblocks),               # reduction (edge) axis last
            in_specs=[
                pl.BlockSpec((1, 1, 1, te), lambda i, e: (i, e, 0, 0)),       # dst ids
                pl.BlockSpec((1, 1, te, F_pad), lambda i, e: (i, e, 0, 0)),   # x[src] rows
                pl.BlockSpec((tm, F_pad), lambda i, e: (i, 0)),               # root rows
            ],
            out_specs=pl.BlockSpec((tm, F_pad), lambda i, e: (i, 0)),
        ),
        compiler_params=pltpu.CompilerParams(
            dimension_semantics=("parallel", "arbitrary"),
        ),
        cost_estimate=cost,
    )(dst_dev, gathered, x_pad)

    return out_pad[:N, :F]


if __name__ == "__main__":
    N = 64          # number of nodes
    F = 32          # num_features
    E = 128         # number of directed edges

    key = jax.random.PRNGKey(0)
    kx, ke = jax.random.split(key)

    x = jax.random.normal(kx, (N, F), dtype=jnp.float32)
    edge_index = jax.random.randint(ke, (2, E), 0, N, dtype=jnp.int32)

    out = embedding_forward(x, edge_index)
    out = jax.block_until_ready(out)

    # Pure-JAX reference: out_i = x_i + sum of incoming neighbor features.
    adj_ref = jnp.zeros((N, N), jnp.float32).at[edge_index[1], edge_index[0]].add(1.0)
    ref = jnp.dot(adj_ref, x, precision=jax.lax.Precision.HIGHEST) + x
    assert out.shape == (N, F)
    assert jnp.allclose(out, ref, atol=1e-4, rtol=1e-4), "mismatch vs reference"

    print("KERNEL_OK")
</pallas_src>

<mosaic_0001>
module attributes {stable_mosaic.version = 11 : i64} {
  func.func @graphconv_segment_sum_kernel(%arg0: i32, %arg1: i32, %arg2: memref<1x1x1x128xi32, #tpu.memory_space<vmem>>, %arg3: memref<1x1x128x128xf32, #tpu.memory_space<vmem>>, %arg4: memref<32x128xf32, #tpu.memory_space<vmem>>, %arg5: memref<32x128xf32, #tpu.memory_space<vmem>>) attributes {dimension_semantics = [#tpu.dimension_semantics<parallel>, #tpu.dimension_semantics<arbitrary>], iteration_bounds = array<i64: 2, 1>, scalar_prefetch = 0 : i64, scratch_operands = 0 : i64, tpu.core_type = #tpu.core_type<tc>, window_params = [{transform_indices = @transform_0, window_bounds = array<i64: 1, 1, 1, 128>}, {transform_indices = @transform_1, window_bounds = array<i64: 1, 1, 128, 128>}, {transform_indices = @transform_2, window_bounds = array<i64: 32, 128>}, {transform_indices = @transform_3, window_bounds = array<i64: 32, 128>}]} {
    %c0_i32 = arith.constant 0 : i32
    %0 = arith.cmpi eq, %arg1, %c0_i32 : i32
    %1 = arith.extui %0 : i1 to i32
    %c0_i32_0 = arith.constant 0 : i32
    %2 = arith.cmpi ne, %1, %c0_i32_0 : i32
    scf.if %2 {
      %c0_14 = arith.constant 0 : index
      %c0_15 = arith.constant 0 : index
      %20 = vector.load %arg4[%c0_14, %c0_15] : memref<32x128xf32, #tpu.memory_space<vmem>>, vector<32x128xf32>
      %c0_16 = arith.constant 0 : index
      %c0_17 = arith.constant 0 : index
      %21 = vector.load %arg5[%c0_16, %c0_17] : memref<32x128xf32, #tpu.memory_space<vmem>>, vector<32x128xf32>
      tpu.vector_store %arg5[%c0_16, %c0_17], %20 {strides = array<i32>} : memref<32x128xf32, #tpu.memory_space<vmem>>, vector<32x128xf32>,
    } else {
    }
    %3 = tpu.iota {dimensions = array<i32: 0>} : vector<32x128xi32>
    %c32_i32 = arith.constant 32 : i32
    %4 = arith.muli %arg0, %c32_i32 : i32
    %5 = vector.broadcast %4 : i32 to vector<32x128xi32>
    %6 = arith.addi %3, %5 : vector<32x128xi32>
    %c0 = arith.constant 0 : index
    %c0_1 = arith.constant 0 : index
    %c0_2 = arith.constant 0 : index
    %c0_3 = arith.constant 0 : index
    %7 = vector.load %arg2[%c0, %c0_1, %c0_2, %c0_3] : memref<1x1x1x128xi32, #tpu.memory_space<vmem>>, vector<1x1x1x128xi32>
    %8 = vector.shape_cast %7 : vector<1x1x1x128xi32> to vector<1x128xi32>
    %9 = vector.broadcast %8 : vector<1x128xi32> to vector<32x128xi32>
    %10 = arith.cmpi eq, %9, %6 : vector<32x128xi32>
    %cst = arith.constant 1.000000e+00 : f32
    %cst_4 = arith.constant 0.000000e+00 : f32
    %11 = vector.broadcast %cst : f32 to vector<32x128xf32>
    %12 = vector.broadcast %cst_4 : f32 to vector<32x128xf32>
    %13 = arith.select %10, %11, %12 : vector<32x128xi1>, vector<32x128xf32>
    %c0_5 = arith.constant 0 : index
    %c0_6 = arith.constant 0 : index
    %14 = vector.load %arg5[%c0_5, %c0_6] : memref<32x128xf32, #tpu.memory_space<vmem>>, vector<32x128xf32>
    %c0_7 = arith.constant 0 : index
    %c0_8 = arith.constant 0 : index
    %c0_9 = arith.constant 0 : index
    %c0_10 = arith.constant 0 : index
    %15 = vector.load %arg3[%c0_7, %c0_8, %c0_9, %c0_10] : memref<1x1x128x128xf32, #tpu.memory_space<vmem>>, vector<1x1x128x128xf32>
    %16 = vector.shape_cast %15 : vector<1x1x128x128xf32> to vector<128x128xf32>
    %cst_11 = arith.constant dense<0.000000e+00> : vector<32x128xf32>
    %17 = tpu.matmul %13, %16, %cst_11 {dimension_numbers = #tpu.dot_dimension_numbers<[1], [0], [0], [1], [0, 0, 1, 1], [], []>} : vector<32x128xf32>, vector<128x128xf32>, vector<32x128xf32> -> vector<32x128xf32>
    %18 = arith.addf %14, %17 : vector<32x128xf32>
    %c0_12 = arith.constant 0 : index
    %c0_13 = arith.constant 0 : index
    %19 = vector.load %arg5[%c0_12, %c0_13] : memref<32x128xf32, #tpu.memory_space<vmem>>, vector<32x128xf32>
    tpu.vector_store %arg5[%c0_12, %c0_13], %18 {strides = array<i32>} : memref<32x128xf32, #tpu.memory_space<vmem>>, vector<32x128xf32>,
    return
  }
  func.func @transform_0(%arg0: i32, %arg1: i32) -> (i32, i32, i32, i32) {
    %c0_i32 = arith.constant 0 : i32
    %c0_i32_0 = arith.constant 0 : i32
    %c0_i32_1 = arith.constant 0 : i32
    return %arg0, %arg1, %c0_i32, %c0_i32_0 : i32, i32, i32, i32
  }
  func.func @transform_1(%arg0: i32, %arg1: i32) -> (i32, i32, i32, i32) {
    %c0_i32 = arith.constant 0 : i32
    %c0_i32_0 = arith.constant 0 : i32
    %c0_i32_1 = arith.constant 0 : i32
    return %arg0, %arg1, %c0_i32, %c0_i32_0 : i32, i32, i32, i32
  }
  func.func @transform_2(%arg0: i32, %arg1: i32) -> (i32, i32) {
    %c0_i32 = arith.constant 0 : i32
    %c0_i32_0 = arith.constant 0 : i32
    return %arg0, %c0_i32 : i32, i32
  }
  func.func @transform_3(%arg0: i32, %arg1: i32) -> (i32, i32) {
    %c0_i32 = arith.constant 0 : i32
    %c0_i32_0 = arith.constant 0 : i32
    return %arg0, %c0_i32 : i32, i32
  }
}

</mosaic_0001>

<bundles_post_ra>
// kernel: tpu_custom_call.1
= control target key start
LH: loop header
LB: loop body
LE: loop exit
PB: predicated region body
PF: predicated region fallthrough
CT: control target
= control target key end

     0   :  { %s1281_s0 = inlined_call_operand.hbm [shape: s32[2,1,1,128], index: 0, kind: input, shape index: {}]   ;;  %s1282_s1 = inlined_call_operand.hbm [shape: f32[2,1,128,128], index: 1, kind: input, shape index: {}]   ;;  %s1283_s2 = inlined_call_operand.hbm [shape: f32[64,128], index: 2, kind: input, shape index: {}]   ;;  %s1284_s3 = inlined_call_operand.hbm [shape: f32[64,128], index: 3, kind: output, shape index: {}]  }
   0x1   :  { %1289 = sst [smem:[#allocation12_spill]] %s1282_s1 }
   0x2   :  { %8 = vsyncpa [#allocation3], 0 }
   0x3   :  { %10 = vsyncpa [#allocation3 + $0x1], 0 }
   0x4   :  { %11 = vsyncpa [#allocation6], 0 }
   0x5   :  { %13 = vsyncpa [#allocation6 + $0x1], 0 }
   0x6   :  { %14 = vsyncpa [#allocation4], 0 }
   0x7   :  { %16 = vsyncpa [#allocation4 + $0x1], 0  ;;  %s988_s12 = smov 0   ;;  %s990_s13 = smov 0  }
   0x8   :  { %s992_s14 = smov 0   ;;  %s994_s15 = smov 0  }
   0x9   :  { %s996_s16 = smov 0   ;;  %s998_s17 = smov 0  }
   0xa LB: > { %s1019_s18 = sadd.s32 4294967295, %s957_s17   ;;  %s570_s19 = sadd.s32 4294967294, %s957_s17   ;;  %s957_s17 = sphi %s998_s17, %s22_s17   ;;  %s953_s16 = sphi %s996_s16, %s1309_s16   ;;  %s949_s15 = sphi %s994_s15, %s1308_s15   ;;  %s945_s14 = sphi %s992_s14, %s1307_s14   ;;  %s941_s13 = sphi %s990_s13, %s1306_s13   ;;  %s937_s12 = sphi %s988_s12, %s1305_s12  }
   0xb   : > { %s34_s20 = sadd.s32 1, %s953_s16  ;;  %s43_s21 = sadd.s32 1, %s945_s14 }
   0xc   : > { %p36_p0 = scmp.ge.s32.totalorder %s34_s20, 2  ;;  %p50_p1 = scmp.ne.s32.totalorder %s945_s14, %s941_s13 }
   0xd   : > { %p51_p2 = scmp.eq.s32.totalorder %s957_s17, 0  ;;  %p56_p3 = scmp.ne.s32.totalorder %s941_s13, %s937_s12 }
   0xe   : > { %s1311_s20 = smov (%p36_p0, %s34_s20), 0  ;;  %p57_p5 = scmp.eq.s32.totalorder %s1019_s18, 0 }
   0xf   : > { %p1031_p4 = por %p51_p2, %p50_p1  ;;  %s38_s23 = ssub.s32 %s953_s16, %s1311_s20 }
  0x10   : > { %p134_p6 = scmp.eq.s32.totalorder %s1019_s18, 1  ;;  %p41_p7 = scmp.eq.s32.totalorder %s38_s23, 0 }
  0x11   : > { %p1039_p8 = por %p57_p5, %p56_p3  ;;  %p140_p10 = scmp.eq.s32.totalorder %s570_s19, 1 }
  0x12   : > { %p1043_p9 = por %p134_p6, %p50_p1  ;;  %p726_p13 = scmp.lt.s32.totalorder %s957_s17, 2 }
  0x13   : > { %s1291_s24 = scalar_select %p1039_p8, 1, 0 }
  0x14   : > { %s1292_s25 = scalar_select %p1043_p9, 1, 0 }
  0x15   : > { %s1048_s26 = scalar_select %p41_p7, %s945_s14, %s43_s21  }
  0x16   : > { %p1050_p11 = por %p140_p10, %p56_p3  ;;  %s1057_s28 = sand.u32 1, %s945_s14  }
  0x17   : > { %s178_s29 = sand.u32 1, %s957_s17   ;;  %s574_s30 = sshll.u32 %s1057_s28, 7 }
  0x18   : > { %s1293_s27 = scalar_select %p1050_p11, 1, 0 }
  0x19   : > { %p1063_p0 = pnand %p726_p13, %p1031_p4  ;;  %s595_s5 = sshll.u32 %s953_s16, 11 }
  0x1a   : > { %s1295_s1 = sld [smem:[#allocation12_spill]]  ;;  %s182_s9 = scalar_lea.vmem [#allocation5], %s574_s30 }
  0x1b   : > { %s191_s10 = sshll.u32 %s182_s9, 4  ;;  %s1075_s11 = scalar_lea.sflag [#allocation6], %s178_s29  ;;  %s1073_s10 = int_to_ptr.vmem [resolvable:$true] %s191_s10 }
  0x1c   : > { %p1081_p2 = pneg %p1063_p0 }
  0x20   : > { %s1071_s8 = scalar_lea.hbm %s1295_s1, %s595_s5  ;;  %s786_s30 = scalar_lea.hbm %s1295_s1, 4096 }
  0x21   : > { %s781_s19 = scalar_lea.hbm %s1071_s8, 2048  ;;  %p787_p5 = scmp.lt.u32.totalorder %s1071_s8, %s1295_s1 }
  0x22   : > { %p782_p1 = scmp.ne.s32.totalorder %s1071_s8, %s781_s19  ;;  %p788_p6 = scmp.lt.u32.totalorder %s786_s30, %s781_s19 }
  0x23   : > { %p790_p10 = scmp.lt.u32.totalorder %s781_s19, %s1071_s8 }
  0x24   : > { %p784_p3 = pnand %p1081_p2, %p782_p1  ;;  %p789_p7 = por %p788_p6, %p787_p5 }
  0x26   : > { %p785_p4 = pneg %p784_p3  ;;  %p791_p13 = por %p790_p10, %p789_p7 }
  0x28   : > { %p792_p12 = pnand %p791_p13, %p785_p4 }
  0x2a   : > { %795 = shalt.err (!%p792_p12)
}
  0x2b   : > { %s796_s29 = scalar_lea.vmem %s1073_s10, 2048  ;;  %s959_s7 = smov [#allocation5]  }
  0x2c   : > { %p797_p1 = scmp.ne.s32.totalorder %s1073_s10, %s796_s29  ;;  %s801_s9 = sshll.u32 %s959_s7, 4  ;;  %s802_s9 = int_to_ptr.vmem [resolvable:$false] %s801_s9 }
  0x2d   : > { %s803_s22 = scalar_lea.vmem %s802_s9, 4096  ;;  %p804_p9 = scmp.lt.s32.totalorder %s1073_s10, %s802_s9 }
  0x2e   : > { %p799_p3 = pnand %p797_p1, %p1081_p2  ;;  %p805_p8 = scmp.lt.s32.totalorder %s803_s22, %s796_s29 }
  0x30   : > { %p800_p11 = pneg %p799_p3  ;;  %p806_p5 = por %p805_p8, %p804_p9 }
  0x32   : > { %p807_p6 = pnand %p806_p5, %p800_p11 }
  0x34   : > { %810 = shalt.err (!%p807_p6)
}
  0x35   : > { %s1287_s19 = smov 128   ;;  %s1288_s23 = smov 8  }
  0x36   : > { %718 = dma.hbm_to_vmem [thread:$0]  (!%p1063_p0), %s1071_s8, 2048, %s1073_s10, %s1075_s11, %s1287_s19, %s1287_s19, %s1288_s23  }
  0x37   : > { %p580_p8 = scmp.ge.s32.totalorder %s957_s17, 1  ;;  %p220_p9 = scmp.lt.s32.totalorder %s957_s17, 3 }
  0x38   : > { %s573_s5 = sshll.u32 %s953_s16, 4  ;;  %s163_s9 = scalar_lea.vmem [#allocation2], %s1057_s28 }
  0x39   : > { %p1110_p11 = pnand %p580_p8, %p220_p9  ;;  %s1118_s7 = scalar_lea.hbm %s1281_s0, %s573_s5 }
  0x3a   : > { %s171_s22 = sshll.u32 %s163_s9, 4  ;;  %s577_s8 = sshll.u32 %s1057_s28, 5  ;;  %s1121_s22 = int_to_ptr.vmem [resolvable:$true] %s171_s22 }
  0x3b   : > { %s1297_s30 = scalar_select %p1110_p11, 1, 0 }
  0x3c   : > { %s161_s10 = scalar_lea.sflag [#allocation3], %s1057_s28  ;;  %s811_s19 = scalar_lea.hbm %s1118_s7, 16 }
  0x3d   : > { %p812_p12 = scmp.ne.s32.totalorder %s1118_s7, %s811_s19  ;;  %s816_s5 = scalar_lea.hbm %s1281_s0, 32 }
  0x3e   : > { %p817_p10 = scmp.lt.u32.totalorder %s1118_s7, %s1281_s0  ;;  %p818_p13 = scmp.lt.u32.totalorder %s816_s5, %s811_s19 }
  0x3f   : > { %p814_p4 = pnand %p812_p12, %p1081_p2  ;;  %p820_p3 = scmp.lt.u32.totalorder %s811_s19, %s1118_s7 }
  0x40   : > { %p819_p1 = por %p818_p13, %p817_p10 }
  0x41   : > { %p815_p7 = pneg %p814_p4 }
  0x42   : > { %p821_p5 = por %p820_p3, %p819_p1 }
  0x44   : > { %p822_p6 = pnand %p821_p5, %p815_p7 }
  0x46   : > { %825 = shalt.err (!%p822_p6)
}
  0x47   : > { %s826_s9 = scalar_lea.vmem %s1121_s22, 16  ;;  %s962_s1 = smov [#allocation2]  }
  0x48   : > { %p827_p8 = scmp.ne.s32.totalorder %s1121_s22, %s826_s9  ;;  %s831_s23 = sshll.u32 %s962_s1, 4  ;;  %s832_s23 = int_to_ptr.vmem [resolvable:$false] %s831_s23 }
  0x49   : > { %s833_s6 = scalar_lea.vmem %s832_s23, 32  ;;  %p834_p4 = scmp.lt.s32.totalorder %s1121_s22, %s832_s23 }
  0x4a   : > { %p829_p9 = pnand %p827_p8, %p1081_p2  ;;  %p835_p11 = scmp.lt.s32.totalorder %s833_s6, %s826_s9 }
  0x4c   : > { %p830_p12 = pneg %p829_p9  ;;  %p836_p10 = por %p835_p11, %p834_p4 }
  0x4e   : > { %p837_p13 = pnand %p836_p10, %p830_p12 }
  0x50   : > { %840 = shalt.err (!%p837_p13)
}
  0x51   : > { %715 = dma.hbm_to_vmem [thread:$0]  (!%p1063_p0), %s1118_s7, 16, %s1121_s22, %s161_s10  }
  0x52   : > { %s596_s19 = sshll.u32 %s953_s16, 9  ;;  %s205_s9 = scalar_lea.vmem [#allocation7], %s577_s8 }
  0x53   : > { %s1150_s1 = scalar_lea.hbm %s1283_s2, %s596_s19  ;;  %s212_s23 = sshll.u32 %s205_s9, 4  ;;  %s1154_s23 = int_to_ptr.vmem [resolvable:$true] %s212_s23 }
  0x54   : > { %s841_s6 = scalar_lea.hbm %s1150_s1, 512  ;;  %s846_s10 = scalar_lea.hbm %s1283_s2, 1024 }
  0x55   : > { %p842_p11 = scmp.ne.s32.totalorder %s1150_s1, %s841_s6  ;;  %p847_p3 = scmp.lt.u32.totalorder %s1150_s1, %s1283_s2 }
  0x56   : > { %p848_p5 = scmp.lt.u32.totalorder %s846_s10, %s841_s6  ;;  %p850_p8 = scmp.lt.u32.totalorder %s841_s6, %s1150_s1 }
  0x57   : > { %p844_p7 = pnand %p842_p11, %p1081_p2 }
  0x58   : > { %p849_p6 = por %p848_p5, %p847_p3 }
  0x59   : > { %p845_p1 = pneg %p844_p7 }
  0x5a   : > { %p851_p9 = por %p850_p8, %p849_p6 }
  0x5c   : > { %p852_p12 = pnand %p851_p9, %p845_p1 }
  0x5e   : > { %855 = shalt.err (!%p852_p12)
}
  0x5f   : > { %s856_s28 = scalar_lea.vmem %s1154_s23, 512  ;;  %s963_s8 = smov [#allocation7]  }
  0x60   : > { %p857_p4 = scmp.ne.s32.totalorder %s1154_s23, %s856_s28  ;;  %s861_s29 = sshll.u32 %s963_s8, 4  ;;  %s862_s29 = int_to_ptr.vmem [resolvable:$false] %s861_s29 }
  0x61   : > { %s863_s9 = scalar_lea.vmem %s862_s29, 1024  ;;  %p864_p11 = scmp.lt.s32.totalorder %s1154_s23, %s862_s29 }
  0x62   : > { %p859_p10 = pnand %p857_p4, %p1081_p2  ;;  %p865_p7 = scmp.lt.s32.totalorder %s863_s9, %s856_s28 }
  0x64   : > { %p860_p13 = pneg %p859_p10  ;;  %p866_p3 = por %p865_p7, %p864_p11 }
  0x66   : > { %p867_p5 = pnand %p866_p3, %p860_p13 }
  0x68   : > { %870 = shalt.err (!%p867_p5)
}
  0x69   : > { %s1298_s6 = smov 8   ;;  %s1299_s7 = smov 128  }
  0x6a   : > { %721 = dma.hbm_to_vmem [thread:$0]  (!%p1063_p0), %s1150_s1, 512, %s1154_s23, %s1075_s11, %s1299_s7, %s1299_s7, %s1298_s6  }
  0x6b   : > { %p1300_p2 = scmp.ne.s32.totalorder %s1297_s30, 0 }
  0x6c   : > { %s1184_s21 = sand.u32 (!%p1300_p2), 1, %s941_s13   ;;  %p1301_p1 = scmp.ne.s32.totalorder (!%p1300_p2), %s1291_s24, 0 }
  0x6d   : > { %224 = sbr.rel (%p1300_p2) target bundleno = 385 (0x181), region = 32  ;;  %s227_s22 = scalar_lea.sflag (!%p1300_p2), [#allocation3], %s1184_s21 }
  0x6e   : > { %s229_s10 = scalar_lea.vmem (!%p1300_p2), [#allocation2], %s1184_s21 }
  0x74   : > { %924 = dma.done.wait (%p1301_p1), %s227_s22, 16  }
  0x75   : > { %926 = vsyncadd (%p1301_p1), %s227_s22, 4294967280  ;;  %s234_s4 = sand.u32 1, %s1019_s18   ;;  %s581_s11 = sshll.u32 %s1184_s21, 7 }
  0x76   : > { %s235_s30 = scalar_lea.sflag [#allocation6], %s234_s4  ;;  %s1194_s1 = scalar_lea.vmem [#allocation5], %s581_s11 }
  0x77   : > { %928 = dma.done.wait (%p1301_p1), %s235_s30, 2560  }
  0x78   : > { %930 = vsyncadd (%p1301_p1), %s235_s30, 4294964736  ;;  %v293_v0 = vlaneseq  ;;  %s584_s23 = sshll.u32 %s949_s15, 5  ;;  %v321_v4 = vld [vmem:[%s1194_s1] sm:$0xff]  ;;  %v322_v5 = vld [vmem:[%s1194_s1 + $0x8] sm:$0xff]  ;;  %v964_v18 = vmov 1.0   ;;  %s582_s18 = sshll.u32 %s1184_s21, 5 }
  0x79   : > { %v1201_v3 = vstv %s584_s23  ;;  %v323_v6 = vld [vmem:[%s1194_s1 + $0x10] sm:$0xff]  ;;  %v656_v7 = vpack.c.bf16 %v322_v5, %v321_v4  ;;  %v324_v8 = vld [vmem:[%s1194_s1 + $0x18] sm:$0xff]  ;;  %v325_v10 = vld [vmem:[%s1194_s1 + $0x20] sm:$0xff]  ;;  %s247_s24 = scalar_lea.vmem [#allocation7], %s582_s18  ;;  %s597_s19 = sshll.u32 %s949_s15, 9 }
  0x7a   : > { %v294_v1 = vshrl.u32 %v293_v0, 7  ;;  %v660_v9 = vpack.c.bf16 %v324_v8, %v323_v6  ;;  %v326_v11 = vld [vmem:[%s1194_s1 + $0x28] sm:$0xff]  ;;  %v585_v15 = vld [vmem:[%s229_s10] ss:$0 sm:$0xff]  ;;  %v327_v16 = vld [vmem:[%s1194_s1 + $0x30] sm:$0xff]  ;;  %s278_s5 = scalar_lea.vmem [#allocation8], %s582_s18  ;;  %s1230_s9 = scalar_lea.hbm %s1284_s3, %s597_s19 }
  0x7b   : > { %657 = vmatprep.subr.bf16.mxu0 %v656_v7  ;;  %688 = vmatprep.subr.bf16.mxu1 %v656_v7  ;;  %v664_v14 = vpack.c.bf16 %v326_v11, %v325_v10  ;;  %v328_v17 = vld [vmem:[%s1194_s1 + $0x38] sm:$0xff]  ;;  %v329_v20 = vld [vmem:[%s1194_s1 + $0x40] sm:$0xff]  ;;  %v330_v21 = vld [vmem:[%s1194_s1 + $0x48] sm:$0xff]  ;;  %s444_s28 = sshll.u32 %s278_s5, 4  ;;  %s431_s15 = scalar_lea.sflag [#allocation4], %s1184_s21  ;;  %s1232_s28 = int_to_ptr.vmem [resolvable:$true] %s444_s28 }
  0x7c   : > { %v296_v2 = vadd.s32 16, %v294_v1  ;;  %v300_v12 = vadd.s32 %v1201_v3, %v294_v1  ;;  %659 = vmatpush3.bf16.msra.mxu0 %v656_v7  ;;  %696 = vmatpush3.bf16.msra.mxu1 %v656_v7  ;;  %v668_v19 = vpack.c.bf16 %v328_v17, %v327_v16  ;;  %v672_v22 = vpack.c.bf16 %v330_v21, %v329_v20  ;;  %v331_v23 = vld [vmem:[%s1194_s1 + $0x50] sm:$0xff]  ;;  %v332_v24 = vld [vmem:[%s1194_s1 + $0x58] sm:$0xff]  ;;  %v333_v26 = vld [vmem:[%s1194_s1 + $0x60] sm:$0xff]  ;;  %s871_s6 = scalar_lea.vmem %s1232_s28, 512  ;;  %p1302_p6 = scmp.ne.s32.totalorder %s1292_s25, 0 }
  0x7d   : > { %661 = vmatprep.subr.bf16.mxu0 %v660_v9  ;;  %689 = vmatprep.subr.bf16.mxu1 %v660_v9  ;;  %v676_v25 = vpack.c.bf16 %v332_v24, %v331_v23  ;;  %v334_v27 = vld [vmem:[%s1194_s1 + $0x68] sm:$0xff]  ;;  %v335_v29 = vld [vmem:[%s1194_s1 + $0x70] sm:$0xff]  ;;  %v336_v30 = vld [vmem:[%s1194_s1 + $0x78] sm:$0xff]  ;;  %v295_v31 = vadd.s32 8, %v294_v1  ;;  %v297_v32 = vadd.s32 24, %v294_v1  ;;  %p872_p0 = scmp.ne.s32.totalorder %s1232_s28, %s871_s6  ;;  %s965_s7 = smov [#allocation8]  }
  0x7e   : > { %v302_v13 = vadd.s32 %v1201_v3, %v296_v2  ;;  %vm309_vm0 = vcmp.eq.s32.totalorder %v585_v15, %v300_v12  ;;  %v680_v28 = vpack.c.bf16 %v334_v27, %v333_v26  ;;  %v684_v33 = vpack.c.bf16 %v336_v30, %v335_v29  ;;  %v286_v36 = vld [vmem:[%s247_s24 + $0x8] sm:$0xff]  ;;  %v288_v37 = vld [vmem:[%s247_s24 + $0x18] sm:$0xff]  ;;  %v285_v38 = vld [vmem:[%s247_s24] sm:$0xff]  ;;  %s875_s22 = sshll.u32 %s965_s7, 4  ;;  %s876_s22 = int_to_ptr.vmem [resolvable:$false] %s875_s22 }
  0x7f   : > { %650 = vmatprep.mubr.msk.f32.mxu0 %vm309_vm0, %v964_v18  ;;  %v301_v34 = vadd.s32 %v1201_v3, %v295_v31  ;;  %v303_v35 = vadd.s32 %v1201_v3, %v297_v32  ;;  %v287_v39 = vld [vmem:[%s247_s24 + $0x10] sm:$0xff]  ;;  %p873_p8 = pnand %p872_p0, %p1302_p6  ;;  %s877_s10 = scalar_lea.vmem %s876_s22, 1024 }
  0x80   : > { %vm311_vm1 = vcmp.eq.s32.totalorder %v585_v15, %v302_v13  ;;  %663 = vmatpush3.bf16.msra.mxu0 %v660_v9  ;;  %697 = vmatpush3.bf16.msra.mxu1 %v660_v9  ;;  %p878_p12 = scmp.lt.s32.totalorder %s1232_s28, %s876_s22  ;;  %p879_p4 = scmp.lt.s32.totalorder %s877_s10, %s871_s6 }
  0x81   : > { %653 = vmatprep.mubr.msk.f32.mxu1 %vm311_vm1, %v964_v18  ;;  %665 = vmatprep.subr.bf16.mxu0 %v664_v14  ;;  %vm310_vm2 = vcmp.eq.s32.totalorder %v585_v15, %v301_v34  ;;  %vm312_vm3 = vcmp.eq.s32.totalorder %v585_v15, %v303_v35  ;;  %p874_p9 = pneg %p873_p8 }
  0x82   : > { %690 = vmatprep.subr.bf16.mxu1 %v664_v14  ;;  %p880_p10 = por %p879_p4, %p878_p12 }
  0x84   : > { %667 = vmatpush3.bf16.msra.mxu0 %v664_v14  ;;  %698 = vmatpush3.bf16.msra.mxu1 %v664_v14  ;;  %p881_p13 = pnand %p880_p10, %p874_p9 }
  0x85   : > { %669 = vmatprep.subr.bf16.mxu0 %v668_v19  ;;  %691 = vmatprep.subr.bf16.mxu1 %v668_v19 }
  0x88   : > { %671 = vmatpush3.bf16.msra.mxu0 %v668_v19  ;;  %699 = vmatpush3.bf16.msra.mxu1 %v668_v19 }
  0x89   : > { %673 = vmatprep.subr.bf16.mxu0 %v672_v22  ;;  %692 = vmatprep.subr.bf16.mxu1 %v672_v22 }
  0x8c   : > { %675 = vmatpush3.bf16.msra.mxu0 %v672_v22  ;;  %700 = vmatpush3.bf16.msra.mxu1 %v672_v22 }
  0x8d   : > { %677 = vmatprep.subr.bf16.mxu0 %v676_v25  ;;  %693 = vmatprep.subr.bf16.mxu1 %v676_v25 }
  0x90   : > { %679 = vmatpush3.bf16.msra.mxu0 %v676_v25  ;;  %701 = vmatpush3.bf16.msra.mxu1 %v676_v25 }
  0x91   : > { %681 = vmatprep.subr.bf16.mxu0 %v680_v28  ;;  %694 = vmatprep.subr.bf16.mxu1 %v680_v28 }
  0x94   : > { %683 = vmatpush3.bf16.msra.mxu0 %v680_v28  ;;  %702 = vmatpush3.bf16.msra.mxu1 %v680_v28 }
  0x95   : > { %685 = vmatprep.subr.bf16.mxu0 %v684_v33  ;;  %695 = vmatprep.subr.bf16.mxu1 %v684_v33 }
  0x98   : > { %687 = vmatpush3.bf16.msra.mxu0 %v684_v33  ;;  %703 = vmatpush3.bf16.msra.mxu1 %v684_v33 }
  0x9b   : > { %651 = vmatmul.mubr.msk.f32.vlgmr.msra.gmra.mrb[0].mxu0 %vm310_vm2, %v964_v18  ;;  %654 = vmatmul.mubr.msk.f32.vlgmr.msra.gmra.mrb[0].mxu1 %vm312_vm3, %v964_v18 }
 0x16e   : > { %v652_v40 = vpop.f32.mrb[0].mxu0  ;;  %v655_v41 = vpop.f32.mrb[0].mxu1 }
 0x16f   : > { %v423_v42 = vadd.f32 %v652_v40, %v286_v36  ;;  %v425_v43 = vadd.f32 %v655_v41, %v288_v37  ;;  %v403_v44 = vpop.f32.mrb[1].mxu0  ;;  %v413_v45 = vpop.f32.mrb[1].mxu1 }
 0x170   : > { %v422_v46 = vadd.f32 %v403_v44, %v285_v38  ;;  %v424_v47 = vadd.f32 %v413_v45, %v287_v39 }
 0x171   : > { %427 = vst [vmem:[%s278_s5 + $0x8] sm:$0xff] %v423_v42  ;;  %429 = vst [vmem:[%s278_s5 + $0x18] sm:$0xff] %v425_v43 }
 0x172   : > { %426 = vst [vmem:[%s278_s5] sm:$0xff] %v422_v46  ;;  %428 = vst [vmem:[%s278_s5 + $0x10] sm:$0xff] %v424_v47 }
 0x173   : > { %884 = shalt.err (!%p881_p13)
}
 0x174   : > { %s885_s4 = scalar_lea.hbm %s1230_s9, 512  ;;  %s889_s1 = scalar_lea.hbm %s1284_s3, 1024 }
 0x175   : > { %p886_p11 = scmp.ne.s32.totalorder %s1230_s9, %s885_s4  ;;  %p890_p5 = scmp.lt.u32.totalorder %s1230_s9, %s1284_s3 }
 0x176   : > { %p891_p2 = scmp.lt.u32.totalorder %s889_s1, %s885_s4  ;;  %p893_p0 = scmp.lt.u32.totalorder %s885_s4, %s1230_s9 }
 0x177   : > { %p887_p7 = pnand %p886_p11, %p1302_p6 }
 0x178   : > { %p892_p1 = por %p891_p2, %p890_p5 }
 0x179   : > { %p888_p3 = pneg %p887_p7 }
 0x17a   : > { %p894_p8 = por %p893_p0, %p892_p1 }
 0x17c   : > { %p895_p9 = pnand %p894_p8, %p888_p3 }
 0x17e   : > { %898 = shalt.err (!%p895_p9)
}
 0x17f   : > { %s966_s24 = smov 128   ;;  %s967_s19 = smov 8  }
 0x180   : > { %710 = dma.vmem_to_hbm [thread:$0]  (%p1302_p6), %s1232_s28, 512, %s1230_s9, %s431_s15, %s966_s24, %s966_s24, %s967_s19  }
 0x181 PF: > { %s459_s5 = sand.u32 1, %s937_s12   ;;  %p1303_p12 = scmp.ne.s32.totalorder %s1293_s27, 0 }
 0x182   : > { %p1304_p4 = scmp.ge.s32.totalorder %s957_s17, 2  ;;  %s460_s8 = scalar_lea.sflag [#allocation4], %s459_s5 }
 0x184   : > { %p723_p10 = pnand %p1304_p4, %p1303_p12 }
 0x186   : > { %932 = dma.done.wait (!%p723_p10), %s460_s8, 512  }
 0x187   : > { %934 = vsyncadd (!%p723_p10), %s460_s8, 4294966784  ;;  %s22_s17 = sadd.s32 1, %s957_s17   ;;  %s1305_s12 = smov %s941_s13 }
 0x188   : > { %p19_p13 = scmp.ge.s32.totalorder %s22_s17, 4   ;;  %s1306_s13 = smov %s945_s14 }
 0x189   : > { %s1307_s14 = smov %s1048_s26  ;;  %s1308_s15 = smov %s953_s16 }
 0x18a   : > { %s1309_s16 = smov %s1311_s20  ;;  %21 = sbr.rel (!%p19_p13) target bundleno = 10 (0xa), region = 105 }
 0x191   :  { %465 = vsyncpa [#allocation3], 1 }
 0x192   :  { %467 = vsyncpa [#allocation3 + $0x1], 1 }
 0x193   :  { %468 = vsyncpa [#allocation6], 1 }
 0x194   :  { %470 = vsyncpa [#allocation6 + $0x1], 1 }
 0x195   :  { %471 = vsyncpa [#allocation4], 1 }
 0x196   :  { %473 = vsyncpa [#allocation4 + $0x1], 1 }

</bundles_post_ra>
